<compile_context>
chip_gen: v7x
topology: tpu7x:2x2x1
jax: 0.10.0
libtpu: 0.0.40
codegen_flags: <defaults>
</compile_context>

<pallas_src>
import functools

import jax
import jax.numpy as jnp
from jax.experimental import pallas as pl
from jax.experimental.pallas import tpu as pltpu


def fourier1d_kernel(x_ref, w2s_ref, w2c_ref, b_ref, o_ref, *, n_modes):
    # x_ref  : (block_rows, lanes) VMEM f32 -- lane-dense tile of sample points
    # w2s_ref: (M,) SMEM f32               -- layer2 weights for the sin features
    # w2c_ref: (M,) SMEM f32               -- layer2 weights for the cos features
    # b_ref  : (1,) SMEM f32               -- layer2 bias
    # o_ref  : (block_rows, lanes) VMEM f32
    x = x_ref[...]

    # Only two transcendentals per point; all higher modes come out of the VPU.
    s1 = jnp.sin(x)
    c1 = jnp.cos(x)
    two_c1 = c1 + c1

    # Hoist every SMEM scalar read out of the vector chain (single sld burst,
    # no per-strip re-reads when Mosaic strip-mines the tile).
    ws = [w2s_ref[k] for k in range(n_modes)]
    wc = [w2c_ref[k] for k in range(n_modes)]
    bias = b_ref[0]

    if n_modes == 1:
        out = ws[0] * s1 + wc[0] * c1 + bias
    else:
        # Clenshaw backward recurrence: b_k = a_k + 2*cos(x)*b_{k+1} - b_{k+2},
        # k = M..1 with b_{M+1} = b_{M+2} = 0, a_k = ws[k-1] / wc[k-1] (modes 1..M).
        # First two steps peeled so no zero vectors are materialized.
        bs2, bc2 = ws[-1], wc[-1]               # b_M      (still scalars)
        bs1 = ws[-2] + two_c1 * bs2             # b_{M-1}  (first vector values)
        bc1 = wc[-2] + two_c1 * bc2
        for k in range(n_modes - 3, -1, -1):    # unrolled; n_modes is trace-time const
            bs1, bs2 = ws[k] + two_c1 * bs1 - bs2, bs1
            bc1, bc2 = wc[k] + two_c1 * bc1 - bc2, bc1
        #   sum_k ws[k-1]*sin(kx) = b1*sin(x)
        #   sum_k wc[k-1]*cos(kx) = b1*cos(x) - b2
        out = bs1 * s1 + (bc1 * c1 - bc2) + bias

    o_ref[...] = out.astype(o_ref.dtype)


def _pick_tiling(n, lanes, block_rows):
    """Choose (lanes, rows, block_rows, grid) per the v5e/v6e/v7x sizing rules."""
    if lanes is None:
        # Wide lane-dense rows for large inputs; narrower rows for small ones so the
        # grid still has >= 2 steps (keeps both v7x TensorCores busy).
        lanes = 1024 if n >= 16 * 1024 else 128
    rows = pl.cdiv(n, lanes)

    if block_rows is None:
        # ~2 MiB f32 input tile (+2 MiB output tile, double-buffered => ~8 MiB VMEM:
        # within the scoped-VMEM defaults on all gens, budgeted against v7x's 64 MiB).
        target = max(8, ((2 << 20) // 4) // lanes)
        block_rows = rows                       # tiny input: one full-extent block
        for parts in (4, 2):                    # prefer >= 4, else >= 2 grid steps
            cand = (rows // parts) // 8 * 8     # keep block_rows a multiple of 8
            if cand >= 8:
                block_rows = min(target, cand)
                break
    block_rows = max(1, min(block_rows, rows))
    grid = pl.cdiv(rows, block_rows)
    return lanes, rows, block_rows, grid


def fourier1d(x, w2, b, *, lanes=None, block_rows=None):
    """Pallas implementation of Fourier1D.forward for 1-D input x of shape (N,).

    w2: (1, 2*M) layer2 weight, laid out [sin block | cos block] along the 2M axis
        (matches torch.cat((sin, cos), dim=1) feature order).
    b : (1, 1) or (1,) layer2 bias.
    """
    n = x.shape[0]
    n_modes = w2.shape[-1] // 2

    lanes, rows, block_rows, grid = _pick_tiling(n, lanes, block_rows)
    n_pad = rows * lanes

    x = x.astype(jnp.float32)
    # Pad only up to a multiple of `lanes`; when N is already lane-aligned this is a
    # free reshape of a contiguous array (no extra padded HBM copy of x).
    x2 = (x if n_pad == n else jnp.pad(x, (0, n_pad - n))).reshape(rows, lanes)
    w2f = w2.reshape(-1).astype(jnp.float32)
    w2s = w2f[:n_modes]                          # sin-feature weights
    w2c = w2f[n_modes:]                          # cos-feature weights
    b1 = b.reshape(1).astype(jnp.float32)

    cost = pl.CostEstimate(
        flops=(6 * n_modes + 10) * n_pad,        # Clenshaw VPU work
        transcendentals=2 * n_pad,               # one sin + one cos per point
        bytes_accessed=8 * n_pad,                # f32 in + f32 out
    )

    out = pl.pallas_call(
        functools.partial(fourier1d_kernel, n_modes=n_modes),
        out_shape=jax.ShapeDtypeStruct((rows, lanes), jnp.float32),
        grid_spec=pltpu.PrefetchScalarGridSpec(
            num_scalar_prefetch=0,
            grid=(grid,),
            in_specs=[
                pl.BlockSpec((block_rows, lanes), lambda i: (i, 0)),  # x (lane-dense)
                pl.BlockSpec(memory_space=pltpu.SMEM),                # w2 (sin half)
                pl.BlockSpec(memory_space=pltpu.SMEM),                # w2 (cos half)
                pl.BlockSpec(memory_space=pltpu.SMEM),                # bias
            ],
            out_specs=pl.BlockSpec((block_rows, lanes), lambda i: (i, 0)),
        ),
        compiler_params=pltpu.CompilerParams(
            dimension_semantics=("parallel",),
        ),
        cost_estimate=cost,
    )(x2, w2s, w2c, b1)

    out = out.reshape(n_pad)
    return out if n_pad == n else out[:n]        # x.squeeze() semantics; drop padding


if __name__ == "__main__":
    n_modes = 10
    N = 4096   # -> lanes=128, rows=32, block_rows=8, grid=4 (shards over both v7x TCs)

    key = jax.random.PRNGKey(0)
    kx, kw, kb = jax.random.split(key, 3)

    # input sample points
    x = jax.random.normal(kx, (N,), dtype=jnp.float32)

    # Scale1D weights: ws[0, i] = i + 1  (only needed by the pure-JAX reference; the
    # kernel bakes the mode indices in statically via the Clenshaw recurrence).
    ws = (jnp.arange(n_modes, dtype=jnp.float32) + 1.0).reshape(1, n_modes)

    # layer2 = nn.Linear(2*n_modes, 1).  The torch __init__ zero-fills weight/bias
    # (making the output identically zero); we use small deterministic random values
    # instead so the kernel does non-trivial work.  Shapes match the module.
    w2 = jax.random.normal(kw, (1, 2 * n_modes), dtype=jnp.float32) * 0.1
    b = jax.random.normal(kb, (1, 1), dtype=jnp.float32) * 0.1

    out = jax.block_until_ready(fourier1d(x, w2, b))

    # pure-JAX reference of the torch forward pass
    phase = x[:, None] * ws                                            # (N, M)
    feat = jnp.concatenate([jnp.sin(phase), jnp.cos(phase)], axis=1)   # (N, 2M)
    ref = (feat @ w2.T + b[0, 0]).reshape(N)                           # squeeze()

    assert out.shape == (N,)
    assert jnp.allclose(out, ref, atol=1e-4, rtol=1e-4), "mismatch vs reference"
    print("KERNEL_OK")
</pallas_src>

<mosaic_0001>
module attributes {stable_mosaic.version = 11 : i64} {
  func.func @fourier1d_kernel(%arg0: i32, %arg1: memref<8x128xf32, #tpu.memory_space<vmem>>, %arg2: memref<10xf32, #tpu.memory_space<smem>>, %arg3: memref<10xf32, #tpu.memory_space<smem>>, %arg4: memref<1xf32, #tpu.memory_space<smem>>, %arg5: memref<8x128xf32, #tpu.memory_space<vmem>>) attributes {dimension_semantics = [#tpu.dimension_semantics<parallel>], iteration_bounds = array<i64: 4>, scalar_prefetch = 0 : i64, scratch_operands = 0 : i64, tpu.core_type = #tpu.core_type<tc>, window_params = [{transform_indices = @transform_0, window_bounds = array<i64: 8, 128>}, {transform_indices = @transform_1, window_bounds = array<i64: 10>}, {transform_indices = @transform_2, window_bounds = array<i64: 10>}, {transform_indices = @transform_3, window_bounds = array<i64: 1>}, {transform_indices = @transform_4, window_bounds = array<i64: 8, 128>}]} {
    %c0 = arith.constant 0 : index
    %c0_0 = arith.constant 0 : index
    %0 = vector.load %arg1[%c0, %c0_0] : memref<8x128xf32, #tpu.memory_space<vmem>>, vector<8x128xf32>
    %1 = math.sin %0 : vector<8x128xf32>
    %2 = math.cos %0 : vector<8x128xf32>
    %3 = arith.addf %2, %2 : vector<8x128xf32>
    %c0_1 = arith.constant 0 : index
    %4 = memref.load %arg2[%c0_1] : memref<10xf32, #tpu.memory_space<smem>>
    %c1 = arith.constant 1 : index
    %5 = memref.load %arg2[%c1] : memref<10xf32, #tpu.memory_space<smem>>
    %c2 = arith.constant 2 : index
    %6 = memref.load %arg2[%c2] : memref<10xf32, #tpu.memory_space<smem>>
    %c3 = arith.constant 3 : index
    %7 = memref.load %arg2[%c3] : memref<10xf32, #tpu.memory_space<smem>>
    %c4 = arith.constant 4 : index
    %8 = memref.load %arg2[%c4] : memref<10xf32, #tpu.memory_space<smem>>
    %c5 = arith.constant 5 : index
    %9 = memref.load %arg2[%c5] : memref<10xf32, #tpu.memory_space<smem>>
    %c6 = arith.constant 6 : index
    %10 = memref.load %arg2[%c6] : memref<10xf32, #tpu.memory_space<smem>>
    %c7 = arith.constant 7 : index
    %11 = memref.load %arg2[%c7] : memref<10xf32, #tpu.memory_space<smem>>
    %c8 = arith.constant 8 : index
    %12 = memref.load %arg2[%c8] : memref<10xf32, #tpu.memory_space<smem>>
    %c9 = arith.constant 9 : index
    %13 = memref.load %arg2[%c9] : memref<10xf32, #tpu.memory_space<smem>>
    %c0_2 = arith.constant 0 : index
    %14 = memref.load %arg3[%c0_2] : memref<10xf32, #tpu.memory_space<smem>>
    %c1_3 = arith.constant 1 : index
    %15 = memref.load %arg3[%c1_3] : memref<10xf32, #tpu.memory_space<smem>>
    %c2_4 = arith.constant 2 : index
    %16 = memref.load %arg3[%c2_4] : memref<10xf32, #tpu.memory_space<smem>>
    %c3_5 = arith.constant 3 : index
    %17 = memref.load %arg3[%c3_5] : memref<10xf32, #tpu.memory_space<smem>>
    %c4_6 = arith.constant 4 : index
    %18 = memref.load %arg3[%c4_6] : memref<10xf32, #tpu.memory_space<smem>>
    %c5_7 = arith.constant 5 : index
    %19 = memref.load %arg3[%c5_7] : memref<10xf32, #tpu.memory_space<smem>>
    %c6_8 = arith.constant 6 : index
    %20 = memref.load %arg3[%c6_8] : memref<10xf32, #tpu.memory_space<smem>>
    %c7_9 = arith.constant 7 : index
    %21 = memref.load %arg3[%c7_9] : memref<10xf32, #tpu.memory_space<smem>>
    %c8_10 = arith.constant 8 : index
    %22 = memref.load %arg3[%c8_10] : memref<10xf32, #tpu.memory_space<smem>>
    %c9_11 = arith.constant 9 : index
    %23 = memref.load %arg3[%c9_11] : memref<10xf32, #tpu.memory_space<smem>>
    %c0_12 = arith.constant 0 : index
    %24 = memref.load %arg4[%c0_12] : memref<1xf32, #tpu.memory_space<smem>>
    %25 = vector.broadcast %13 : f32 to vector<8x128xf32>
    %26 = arith.mulf %3, %25 : vector<8x128xf32>
    %27 = vector.broadcast %12 : f32 to vector<8x128xf32>
    %28 = arith.addf %27, %26 : vector<8x128xf32>
    %29 = vector.broadcast %23 : f32 to vector<8x128xf32>
    %30 = arith.mulf %3, %29 : vector<8x128xf32>
    %31 = vector.broadcast %22 : f32 to vector<8x128xf32>
    %32 = arith.addf %31, %30 : vector<8x128xf32>
    %33 = arith.mulf %3, %28 : vector<8x128xf32>
    %34 = vector.broadcast %11 : f32 to vector<8x128xf32>
    %35 = arith.addf %34, %33 : vector<8x128xf32>
    %36 = vector.broadcast %13 : f32 to vector<8x128xf32>
    %37 = arith.subf %35, %36 : vector<8x128xf32>
    %38 = arith.mulf %3, %32 : vector<8x128xf32>
    %39 = vector.broadcast %21 : f32 to vector<8x128xf32>
    %40 = arith.addf %39, %38 : vector<8x128xf32>
    %41 = vector.broadcast %23 : f32 to vector<8x128xf32>
    %42 = arith.subf %40, %41 : vector<8x128xf32>
    %43 = arith.mulf %3, %37 : vector<8x128xf32>
    %44 = vector.broadcast %10 : f32 to vector<8x128xf32>
    %45 = arith.addf %44, %43 : vector<8x128xf32>
    %46 = arith.subf %45, %28 : vector<8x128xf32>
    %47 = arith.mulf %3, %42 : vector<8x128xf32>
    %48 = vector.broadcast %20 : f32 to vector<8x128xf32>
    %49 = arith.addf %48, %47 : vector<8x128xf32>
    %50 = arith.subf %49, %32 : vector<8x128xf32>
    %51 = arith.mulf %3, %46 : vector<8x128xf32>
    %52 = vector.broadcast %9 : f32 to vector<8x128xf32>
    %53 = arith.addf %52, %51 : vector<8x128xf32>
    %54 = arith.subf %53, %37 : vector<8x128xf32>
    %55 = arith.mulf %3, %50 : vector<8x128xf32>
    %56 = vector.broadcast %19 : f32 to vector<8x128xf32>
    %57 = arith.addf %56, %55 : vector<8x128xf32>
    %58 = arith.subf %57, %42 : vector<8x128xf32>
    %59 = arith.mulf %3, %54 : vector<8x128xf32>
    %60 = vector.broadcast %8 : f32 to vector<8x128xf32>
    %61 = arith.addf %60, %59 : vector<8x128xf32>
    %62 = arith.subf %61, %46 : vector<8x128xf32>
    %63 = arith.mulf %3, %58 : vector<8x128xf32>
    %64 = vector.broadcast %18 : f32 to vector<8x128xf32>
    %65 = arith.addf %64, %63 : vector<8x128xf32>
    %66 = arith.subf %65, %50 : vector<8x128xf32>
    %67 = arith.mulf %3, %62 : vector<8x128xf32>
    %68 = vector.broadcast %7 : f32 to vector<8x128xf32>
    %69 = arith.addf %68, %67 : vector<8x128xf32>
    %70 = arith.subf %69, %54 : vector<8x128xf32>
    %71 = arith.mulf %3, %66 : vector<8x128xf32>
    %72 = vector.broadcast %17 : f32 to vector<8x128xf32>
    %73 = arith.addf %72, %71 : vector<8x128xf32>
    %74 = arith.subf %73, %58 : vector<8x128xf32>
    %75 = arith.mulf %3, %70 : vector<8x128xf32>
    %76 = vector.broadcast %6 : f32 to vector<8x128xf32>
    %77 = arith.addf %76, %75 : vector<8x128xf32>
    %78 = arith.subf %77, %62 : vector<8x128xf32>
    %79 = arith.mulf %3, %74 : vector<8x128xf32>
    %80 = vector.broadcast %16 : f32 to vector<8x128xf32>
    %81 = arith.addf %80, %79 : vector<8x128xf32>
    %82 = arith.subf %81, %66 : vector<8x128xf32>
    %83 = arith.mulf %3, %78 : vector<8x128xf32>
    %84 = vector.broadcast %5 : f32 to vector<8x128xf32>
    %85 = arith.addf %84, %83 : vector<8x128xf32>
    %86 = arith.subf %85, %70 : vector<8x128xf32>
    %87 = arith.mulf %3, %82 : vector<8x128xf32>
    %88 = vector.broadcast %15 : f32 to vector<8x128xf32>
    %89 = arith.addf %88, %87 : vector<8x128xf32>
    %90 = arith.subf %89, %74 : vector<8x128xf32>
    %91 = arith.mulf %3, %86 : vector<8x128xf32>
    %92 = vector.broadcast %4 : f32 to vector<8x128xf32>
    %93 = arith.addf %92, %91 : vector<8x128xf32>
    %94 = arith.subf %93, %78 : vector<8x128xf32>
    %95 = arith.mulf %3, %90 : vector<8x128xf32>
    %96 = vector.broadcast %14 : f32 to vector<8x128xf32>
    %97 = arith.addf %96, %95 : vector<8x128xf32>
    %98 = arith.subf %97, %82 : vector<8x128xf32>
    %99 = arith.mulf %94, %1 : vector<8x128xf32>
    %100 = arith.mulf %98, %2 : vector<8x128xf32>
    %101 = arith.subf %100, %90 : vector<8x128xf32>
    %102 = arith.addf %99, %101 : vector<8x128xf32>
    %103 = vector.broadcast %24 : f32 to vector<8x128xf32>
    %104 = arith.addf %102, %103 : vector<8x128xf32>
    %c0_13 = arith.constant 0 : index
    %c0_14 = arith.constant 0 : index
    %105 = vector.load %arg5[%c0_13, %c0_14] : memref<8x128xf32, #tpu.memory_space<vmem>>, vector<8x128xf32>
    tpu.vector_store %arg5[%c0_13, %c0_14], %104 {strides = array<i32>} : memref<8x128xf32, #tpu.memory_space<vmem>>, vector<8x128xf32>,
    return
  }
  func.func @transform_0(%arg0: i32) -> (i32, i32) {
    %c0_i32 = arith.constant 0 : i32
    %c0_i32_0 = arith.constant 0 : i32
    return %arg0, %c0_i32 : i32, i32
  }
  func.func @transform_1(%arg0: i32) -> i32 {
    %c0_i32 = arith.constant 0 : i32
    %c0_i32_0 = arith.constant 0 : i32
    return %c0_i32 : i32
  }
  func.func @transform_2(%arg0: i32) -> i32 {
    %c0_i32 = arith.constant 0 : i32
    %c0_i32_0 = arith.constant 0 : i32
    return %c0_i32 : i32
  }
  func.func @transform_3(%arg0: i32) -> i32 {
    %c0_i32 = arith.constant 0 : i32
    %c0_i32_0 = arith.constant 0 : i32
    return %c0_i32 : i32
  }
  func.func @transform_4(%arg0: i32) -> (i32, i32) {
    %c0_i32 = arith.constant 0 : i32
    %c0_i32_0 = arith.constant 0 : i32
    return %arg0, %c0_i32 : i32, i32
  }
}

</mosaic_0001>

<bundles_post_ra>
// kernel: tpu_custom_call.1
= control target key start
LH: loop header
LB: loop body
LE: loop exit
PB: predicated region body
PF: predicated region fallthrough
CT: control target
= control target key end

     0   :  { %s1199_s0 = inlined_call_operand.hbm [shape: f32[32,128], index: 0, kind: input, shape index: {}]   ;;  %s1200_s1 = inlined_call_operand.vmem [shape: f32[10], index: 1, kind: input, shape index: {}]   ;;  %s1201_s2 = inlined_call_operand.vmem [shape: f32[10], index: 2, kind: input, shape index: {}]   ;;  %s1202_s3 = inlined_call_operand.<no memory space> [shape: f32[1], index: 3, kind: input, shape index: {}]   ;;  %s1203_s4 = inlined_call_operand.hbm [shape: f32[32,128], index: 4, kind: output, shape index: {}]  }
   0x1   :  { %9 = sst [smem:[#allocation2]] %s1202_s3 }
   0x2   :  { %10 = vsyncpa [#allocation4], 0 }
   0x3   :  { %12 = vsyncpa [#allocation4 + $0x1], 0 }
   0x4   :  { %13 = vsyncpa [#allocation6], 0 }
   0x5   :  { %14 = vsyncpa [#allocation9], 0 }
   0x6   :  { %15 = vsyncpa [#allocation5], 0 }
   0x7   :  { %17 = vsyncpa [#allocation5 + $0x1], 0  ;;  %s953_s17 = smov 0   ;;  %s955_s18 = smov 0  }
   0x8   :  { %s957_s19 = smov 0   ;;  %s959_s20 = smov 0  }
   0x9 LB: > { %s974_s3 = sadd.s32 4294967295, %s913_s20   ;;  %s656_s21 = sadd.s32 4294967294, %s913_s20   ;;  %s913_s20 = sphi %s959_s20, %s1224_s20   ;;  %s909_s19 = sphi %s957_s19, %s1223_s19   ;;  %s905_s18 = sphi %s955_s18, %s1222_s18   ;;  %s901_s17 = sphi %s953_s17, %s1221_s17  }
   0xa   : > { %p43_p0 = scmp.ne.s32.totalorder %s905_s18, %s901_s17  ;;  %p1204_p1 = scmp.eq.s32.totalorder %s974_s3, 0 }
   0xb   : > { %p136_p3 = scmp.eq.s32.totalorder %s656_s21, 3  ;;  %p657_p5 = scmp.ge.s32.totalorder %s913_s20, 1 }
   0xc   : > { %p983_p4 = por %p1204_p1, %p43_p0  ;;  %p143_p7 = scmp.lt.s32.totalorder %s913_s20, 5 }
   0xd   : > { %p988_p6 = por %p136_p3, %p43_p0  ;;  %s156_s26 = sshll.u32 %s1200_s1, 4  ;;  %s157_s26 = int_to_ptr.vmem [resolvable:$true] %s156_s26 }
   0xe   : > { %s1207_s22 = scalar_select %p983_p4, 1, 0 }
   0xf   : > { %s1208_s23 = scalar_select %p988_p6, 1, 0 }
  0x10   : > { %p996_p8 = pnand %p657_p5, %p143_p7  ;;  %s167_s30 = sshll.u32 %s1201_s2, 4  ;;  %s168_s30 = int_to_ptr.vmem [resolvable:$true] %s167_s30 }
  0x11   : > { %s1012_s6 = sadd.s32 1, %s913_s20   ;;  %s779_s8 = scalar_lea.vmem %s157_s26, 16 }
  0x12   : > { %s1209_s27 = scalar_select %p996_p8, 1, 0 }
  0x13   : > { %p714_p9 = pneg %p996_p8  ;;  %s27_s7 = ssub.s32 %s913_s20, %s1012_s6 }
  0x14   : > { %p780_p11 = scmp.ne.s32.totalorder %s157_s26, %s779_s8  ;;  %p787_p3 = scmp.lt.s32.totalorder %s157_s26, %s157_s26 }
  0x15   : > { %p1007_p10 = pnand %p714_p9, %p1204_p1  ;;  %p788_p5 = scmp.lt.s32.totalorder %s779_s8, %s779_s8 }
  0x17   : > { %p781_p12 = pneg %p1007_p10  ;;  %p789_p7 = por %p788_p5, %p787_p3 }
  0x19   : > { %p782_p13 = pnand %p781_p12, %p780_p11 }
  0x1b   : > { %p783_p0 = pneg %p782_p13 }
  0x1d   : > { %p790_p2 = pnand %p789_p7, %p783_p0 }
  0x1f   : > { %793 = shalt.err (!%p790_p2)
}
  0x20   : > { %s915_s9 = smov [#allocation7]   ;;  %s794_s10 = scalar_lea.vmem %s168_s30, 16 }
  0x21   : > { %717 = dma.vmem_to_smem (!%p1007_p10), %s157_s26, 16, %s915_s9, [#allocation6]  }
  0x22   : > { %p795_p9 = scmp.ne.s32.totalorder %s168_s30, %s794_s10  ;;  %p802_p4 = scmp.lt.s32.totalorder %s168_s30, %s168_s30 }
  0x23   : > { %p803_p8 = scmp.lt.s32.totalorder %s794_s10, %s794_s10 }
  0x24   : > { %p797_p1 = pnand %p795_p9, %p781_p12 }
  0x25   : > { %p804_p11 = por %p803_p8, %p802_p4 }
  0x26   : > { %p798_p6 = pneg %p797_p1 }
  0x28   : > { %p805_p13 = pnand %p804_p11, %p798_p6 }
  0x2a   : > { %808 = shalt.err (!%p805_p13)
}
  0x2b   : > { %s916_s11 = smov [#allocation8]   ;;  %p28_p2 = scmp.eq.s32.totalorder %s27_s7, 0 }
  0x2c   : > { %720 = dma.vmem_to_smem (!%p1007_p10), %s168_s30, 16, %s916_s11, [#allocation9]  }
  0x2d   : > { %s30_s12 = sadd.s32 1, %s909_s19  ;;  %p37_p1 = scmp.ne.s32.totalorder %s909_s19, %s905_s18 }
  0x2e   : > { %p38_p12 = scmp.eq.s32.totalorder %s913_s20, 0  ;;  %p1211_p6 = scmp.eq.s32.totalorder %s974_s3, 3 }
  0x2f   : > { %s1027_s13 = scalar_select %p28_p2, %s909_s19, %s30_s12  }
  0x30   : > { %p39_p4 = por %p38_p12, %p37_p1  ;;  %p1031_p8 = por %p1211_p6, %p37_p1 }
  0x31   : > { %p731_p0 = scmp.lt.s32.totalorder %s913_s20, 4  ;;  %s181_s15 = sand.u32 1, %s909_s19  }
  0x32   : > { %s661_s16 = sshll.u32 %s181_s15, 3  ;;  %s662_s21 = sshll.u32 %s913_s20, 7 }
  0x33   : > { %s1041_s26 = scalar_lea.hbm %s1199_s0, %s662_s21  ;;  %s185_s28 = scalar_lea.vmem [#allocation3], %s661_s16 }
  0x34   : > { %s192_s29 = sshll.u32 %s185_s28, 4  ;;  %p1045_p10 = pnand %p731_p0, %p39_p4  ;;  %s1043_s29 = int_to_ptr.vmem [resolvable:$true] %s192_s29 }
  0x35   : > { %s182_s5 = scalar_lea.sflag [#allocation4], %s181_s15  ;;  %s809_s7 = scalar_lea.hbm %s1041_s26, 128 }
  0x36   : > { %p810_p3 = scmp.ne.s32.totalorder %s1041_s26, %s809_s7  ;;  %p811_p5 = pneg %p1045_p10 }
  0x37   : > { %s814_s10 = scalar_lea.hbm %s1199_s0, 512  ;;  %p815_p11 = scmp.lt.u32.totalorder %s1041_s26, %s1199_s0 }
  0x38   : > { %p812_p7 = pnand %p811_p5, %p810_p3  ;;  %p816_p13 = scmp.lt.u32.totalorder %s814_s10, %s809_s7 }
  0x39   : > { %p818_p1 = scmp.lt.u32.totalorder %s809_s7, %s1041_s26 }
  0x3a   : > { %p813_p9 = pneg %p812_p7  ;;  %p817_p2 = por %p816_p13, %p815_p11 }
  0x3c   : > { %p819_p12 = por %p818_p1, %p817_p2 }
  0x3e   : > { %p820_p4 = pnand %p819_p12, %p813_p9 }
  0x40   : > { %823 = shalt.err (!%p820_p4)
}
  0x41   : > { %s824_s15 = scalar_lea.vmem %s1043_s29, 128  ;;  %s917_s16 = smov [#allocation3]  }
  0x42   : > { %p825_p6 = scmp.ne.s32.totalorder %s1043_s29, %s824_s15  ;;  %s829_s21 = sshll.u32 %s917_s16, 4  ;;  %s830_s21 = int_to_ptr.vmem [resolvable:$false] %s829_s21 }
  0x43   : > { %s831_s24 = scalar_lea.vmem %s830_s21, 256  ;;  %p832_p7 = scmp.lt.s32.totalorder %s1043_s29, %s830_s21 }
  0x44   : > { %p827_p0 = pnand %p825_p6, %p811_p5  ;;  %p833_p11 = scmp.lt.s32.totalorder %s831_s24, %s824_s15 }
  0x46   : > { %p828_p3 = pneg %p827_p0  ;;  %p834_p13 = por %p833_p11, %p832_p7 }
  0x48   : > { %p835_p2 = pnand %p834_p13, %p828_p3 }
  0x4a   : > { %838 = shalt.err (!%p835_p2)
}
  0x4b   : > { %724 = dma.hbm_to_vmem [thread:$0]  (!%p1045_p10), %s1041_s26, 128, %s1043_s29, %s182_s5  }
  0x4c   : > { %p1214_p9 = scmp.ne.s32.totalorder %s1209_s27, 0 }
  0x4d   : > { %s1077_s25 = sand.u32 (!%p1214_p9), 1, %s905_s18   ;;  %p1215_p5 = scmp.ne.s32.totalorder (!%p1214_p9), %s1207_s22, 0 }
  0x4e   : > { %201 = sbr.rel (%p1214_p9) target bundleno = 252 (0xfc), region = 36  ;;  %s664_s28 = sshll.u32 (!%p1214_p9), %s1077_s25, 3 }
  0x4f   : > { %s204_s7 = scalar_lea.sflag (!%p1214_p9), [#allocation4], %s1077_s25  ;;  %s207_s8 = scalar_lea.vmem (!%p1214_p9), [#allocation3], %s664_s28 }
  0x55   : > { %884 = dma.done.wait (%p1215_p5), %s204_s7, 128  }
  0x56   : > { %886 = vsyncadd (%p1215_p5), %s204_s7, 4294967168  ;;  %p1216_p10 = scmp.eq.s32.totalorder %s974_s3, 0 }
  0x58   : > { %888 = dma.done.wait (%p1216_p10), [#allocation6], 16   ;;  %p1217_p1 = pmov %p1216_p10 }
  0x5a   : > { %890 = vsyncadd (%p1217_p1), [#allocation6], 4294967280  ;;  %p1218_p12 = pmov %p1217_p1 }
  0x5b   : > { %p1219_p4 = pmov %p1217_p1 }
  0x5c   : > { %892 = dma.done.wait (%p1218_p12), [#allocation9], 16  }
  0x5d   : > { %894 = vsyncadd (%p1219_p4), [#allocation9], 4294967280 }
  0x5e   : > { %220 = sfence }
  0x5f   : > { %v1095_v0 = vld [vmem:[%s207_s8] sm:$0xff]  ;;  %v918_v12 = vmov 683565275   ;;  %v919_v14 = vmov 2475754826   ;;  %s1115_s22 = sld [smem:[#allocation7 + $0x9]] }
  0x60   : > { %v245_v1 = vand.u32 2139095040, %v1095_v0  ;;  %v242_v3 = vand.u32 2147483647, %v1095_v0  ;;  %v920_v16 = vmov 2131351028   ;;  %vm244_vm7 = vcmp.lt.s32.totalorder %v1095_v0, 0 }
  0x61   : > { %v921_v18 = vmov 2102212464   ;;  %v922_v20 = vmov 920167782   ;;  %v923_v27 = vmov 1326507024   ;;  %vm334_vm15 = vweird.f32 %v1095_v0 }
  0x62   : > { %v246_v2 = vshrl.u32 %v245_v1, 23  ;;  %v249_v6 = vand.u32 8388607, %v242_v3  ;;  %vm243_vm8 = vcmp.le.f32.partialorder %v242_v3, 0.7853982  ;;  %s1117_s27 = sld [smem:[#allocation8 + $0x9]] }
  0x63   : > { %s683_s26 = sld [smem:[#allocation7 + $0x8]]  ;;  %s682_s30 = sld [smem:[#allocation7 + $0x7]] }
  0x64   : > { %v668_v4 = vadd.s32 4294967169, %v246_v2  ;;  %v250_v9 = vor.u32 8388608, %v249_v6  ;;  %s692_s29 = sld [smem:[#allocation8 + $0x8]]  ;;  %s691_s5 = sld [smem:[#allocation8 + $0x7]] }
  0x65   : > { %s681_s9 = sld [smem:[#allocation7 + $0x6]]  ;;  %s680_s11 = sld [smem:[#allocation7 + $0x5]] }
  0x66   : > { %v252_v5 = vadd.s32 1, %v668_v4  ;;  %v290_v29 = vshll.u32 %v250_v9, 8  ;;  %s690_s10 = sld [smem:[#allocation8 + $0x6]]  ;;  %s689_s12 = sld [smem:[#allocation8 + $0x5]] }
  0x67   : > { %s679_s15 = sld [smem:[#allocation7 + $0x4]]  ;;  %s678_s21 = sld [smem:[#allocation7 + $0x3]] }
  0x68   : > { %vm253_vm0 = vcmp.gt.s32.totalorder %v252_v5, 0  ;;  %s688_s16 = sld [smem:[#allocation8 + $0x4]]  ;;  %s687_s24 = sld [smem:[#allocation8 + $0x3]] }
  0x69   : > { %v254_v7 = vsel %vm253_vm0, %v252_v5, 0  ;;  %s677_s7 = sld [smem:[#allocation7 + $0x2]] }
  0x6a   : > { %v256_v8 = vand.u32 31, %v254_v7  ;;  %v255_v10 = vshrl.u32 %v254_v7, 5  ;;  %s686_s8 = sld [smem:[#allocation8 + $0x2]] }
  0x6c   : > { %v257_v11 = vsub.s32 32, %v256_v8  ;;  %v259_v13 = vshll.u32 %v918_v12, %v256_v8  ;;  %v262_v15 = vshll.u32 %v919_v14, %v256_v8  ;;  %v265_v17 = vshll.u32 %v920_v16, %v256_v8 }
  0x6d   : > { %v268_v19 = vshll.u32 %v921_v18, %v256_v8  ;;  %v271_v21 = vshll.u32 %v922_v20, %v256_v8  ;;  %vm274_vm1 = vcmp.lt.s32.totalorder %v255_v10, 1  ;;  %vm277_vm2 = vcmp.lt.s32.totalorder %v255_v10, 4 }
  0x6e   : > { %v258_v22 = vshrl.u32 %v918_v12, %v257_v11  ;;  %v260_v23 = vshrl.u32 %v919_v14, %v257_v11  ;;  %v263_v24 = vshrl.u32 %v920_v16, %v257_v11  ;;  %v266_v25 = vshrl.u32 %v921_v18, %v257_v11 }
  0x6f   : > { %v269_v26 = vshrl.u32 %v922_v20, %v257_v11  ;;  %v272_v28 = vshrl.u32 %v923_v27, %v257_v11  ;;  %vm275_vm3 = vcmp.lt.s32.totalorder %v255_v10, 2  ;;  %vm276_vm4 = vcmp.lt.s32.totalorder %v255_v10, 3 }
  0x70   : > { %v261_v30 = vor.u32 %v260_v23, %v259_v13  ;;  %v264_v31 = vor.u32 %v263_v24, %v262_v15  ;;  %v267_v32 = vor.u32 %v266_v25, %v265_v17 }
  0x71   : > { %v270_v33 = vor.u32 %v269_v26, %v268_v19  ;;  %v273_v34 = vor.u32 %v272_v28, %v271_v21 }
  0x72   : > { %v278_v35 = vsel %vm274_vm1, %v258_v22, %v261_v30  ;;  %v279_v36 = vsel %vm277_vm2, %v267_v32, 2102212464  ;;  %v282_v37 = vsel %vm274_vm1, %v261_v30, %v264_v31  ;;  %v286_v38 = vsel %vm274_vm1, %v264_v31, %v267_v32 }
  0x73   : > { %v280_v39 = vsel %vm276_vm4, %v264_v31, %v279_v36  ;;  %v283_v40 = vsel %vm277_vm2, %v270_v33, 920167782  ;;  %v287_v41 = vsel %vm277_vm2, %v273_v34, 1326507024  ;;  %v471_v34 = vstv %s1115_s22  ;;  %s676_s22 = sld [smem:[#allocation7 + $0x1]] }
  0x74   : > { %v284_v42 = vsel %vm276_vm4, %v267_v32, %v283_v40  ;;  %v288_v43 = vsel %vm276_vm4, %v270_v33, %v287_v41  ;;  %v281_v44 = vsel %vm275_vm3, %v278_v35, %v280_v39  ;;  %v475_v35 = vstv %s1117_s27  ;;  %s685_s27 = sld [smem:[#allocation8 + $0x1]] }
  0x75   : > { %v285_v45 = vsel %vm275_vm3, %v282_v37, %v284_v42  ;;  %v289_v46 = vsel %vm275_vm3, %v286_v38, %v288_v43  ;;  %v297_v51 = vmul.u32 %v290_v29, %v281_v44  ;;  %v473_v37 = vstv %s683_s26  ;;  %s450_s26 = sld [smem:[#allocation7]] }
  0x76   : > { %v1101_v47 = vmul.u32.u64.low %v290_v29, %v289_v46  ;;  %v1102_v48 = vmul.u32.u64.high %v290_v29, %v289_v46, %v1101_v47  ;;  %v1104_v49 = vmul.u32.u64.low %v290_v29, %v285_v45  ;;  %v1105_v50 = vmul.u32.u64.high %v290_v29, %v285_v45, %v1104_v49 }
  0x77   : > { %v480_v42 = vstv %s682_s30  ;;  %v484_v43 = vstv %s691_s5  ;;  %s470_s30 = sld [smem:[#allocation2]]  ;;  %s695_s5 = sshll.u32 %s974_s3, 7 }
  0x78   : > { %vm299_vm5 = vc.u32 %v1102_v48, %v1104_v49  ;;  %v300_v52 = vadd.s32 1, %v1105_v50  ;;  %v298_v63 = vadd.s32 %v1104_v49, %v1102_v48  ;;  %s924_s3 = smov [#allocation10]  }
  0x7a   : > { %v301_v53 = vsel %vm299_vm5, %v300_v52, %v1105_v50  ;;  %v488_v50 = vstv %s681_s9  ;;  %s240_s9 = scalar_lea.vmem [#allocation10], %s664_s28  ;;  %s843_s28 = sshll.u32 %s924_s3, 4  ;;  %s844_s28 = int_to_ptr.vmem [resolvable:$false] %s843_s28 }
  0x7b   : > { %v302_v54 = vadd.s32 %v301_v53, %v297_v51  ;;  %v492_v51 = vstv %s690_s10  ;;  %s564_s10 = sshll.u32 %s240_s9, 4  ;;  %s1158_s10 = int_to_ptr.vmem [resolvable:$true] %s564_s10 }
  0x7c   : > { %p846_p7 = scmp.lt.s32.totalorder %s1158_s10, %s844_s28 }
  0x7d   : > { %v303_v55 = vadd.s32 536870912, %v302_v54 }
  0x7f   : > { %v304_v56 = vshrl.u32 %v303_v55, 30 }
  0x81   : > { %v305_v57 = vshll.u32 %v304_v56, 30  ;;  %v328_v14 = vsub.s32 4, %v304_v56 }
  0x83   : > { %v306_v58 = vsub.s32 %v302_v54, %v305_v57  ;;  %v329_v17 = vsel %vm244_vm7, %v328_v14, %v304_v56 }
  0x84   : > { %v331_v19 = vsel %vm243_vm8, 0, %v329_v17 }
  0x85   : > { %v308_v59 = vsub.s32 0, %v306_v58  ;;  %v335_v20 = vadd.s32 3, %v331_v19  ;;  %v439_v22 = vand.u32 3, %v331_v19 }
  0x87   : > { %v669_v60 = vmin.u32 %v308_v59, %v306_v58  ;;  %v336_v21 = vand.u32 3, %v335_v20  ;;  %vm444_vm10 = vcmp.eq.s32.totalorder %v439_v22, 2  ;;  %vm441_vm12 = vcmp.eq.s32.totalorder %v439_v22, 0 }
  0x88   : > { %vm440_vm14 = vcmp.lt.s32.totalorder %v439_v22, 2  ;;  %v500_v59 = vstv %s689_s12  ;;  %v520_v20 = vstv %s677_s7 }
  0x89   : > { %v310_v61 = vclz %v669_v60  ;;  %vm341_vm9 = vcmp.eq.s32.totalorder %v336_v21, 2  ;;  %vm338_vm11 = vcmp.eq.s32.totalorder %v336_v21, 0  ;;  %vm337_vm13 = vcmp.lt.s32.totalorder %v336_v21, 2 }
  0x8a   : > { %v524_v21 = vstv %s686_s8 }
  0x8b   : > { %v670_v62 = vadd.s32 4294967294, %v310_v61 }
  0x8d   : > { %vm671_vm6 = vcmp.lt.s32.totalorder %v670_v62, 0 }
  0x8e   : > { %v313_v1 = vsel %vm671_vm6, 0, %v670_v62 }
  0x8f   : > { %v314_v2 = vsub.s32 32, %v313_v1  ;;  %v315_v4 = vshll.u32 %v306_v58, %v313_v1  ;;  %v318_v5 = vsub.s32 4294967266, %v313_v1  ;;  %v496_v58 = vstv %s680_s11 }
  0x91   : > { %v316_v6 = vshrl.u32 %v298_v63, %v314_v2  ;;  %v319_v7 = vadd.s32 127, %v318_v5  ;;  %v508_v5 = vstv %s688_s16  ;;  %s551_s16 = scalar_lea.sflag [#allocation5], %s1077_s25 }
  0x93   : > { %v317_v8 = vor.u32 %v316_v6, %v315_v4  ;;  %v320_v9 = vshll.u32 %v319_v7, 23  ;;  %v504_v4 = vstv %s679_s15  ;;  %s1156_s15 = scalar_lea.hbm %s1203_s4, %s695_s5 }
  0x95   : > { %v321_v10 = vor.u32 4788187, %v320_v9  ;;  %v324_v11 = vcvt.s32.f32 %v317_v8 }
  0x97   : > { %v322_v12 = vand.u32 2147483647, %v321_v10 }
  0x99   : > { %v325_v13 = vmul.f32 %v324_v11, %v322_v12  ;;  %v512_v12 = vstv %s678_s21  ;;  %s839_s21 = scalar_lea.vmem %s1158_s10, 128 }
  0x9a   : > { %p840_p6 = scmp.ne.s32.totalorder %s1158_s10, %s839_s21 }
  0x9b   : > { %v326_v15 = vxor.u32 2147483648, %v325_v13 }
  0x9c   : > { %p841_p0 = pnand %p840_p6, %p1031_p8 }
  0x9d   : > { %v327_v16 = vsel %vm244_vm7, %v326_v15, %v325_v13  ;;  %v516_v13 = vstv %s687_s24  ;;  %s845_s24 = scalar_lea.vmem %s844_s28, 256 }
  0x9e   : > { %v330_v18 = vsel %vm243_vm8, %v1095_v0, %v327_v16  ;;  %v477_v0 = vstv %s692_s29  ;;  %s460_s29 = sld [smem:[#allocation8]]  ;;  %p842_p3 = pneg %p841_p0 }
  0x9f   : > { %775 = vcosq.f32 %v330_v18  ;;  %p847_p11 = scmp.lt.s32.totalorder %s845_s24, %s839_s21 }
  0xa0   : > { %777 = vsinq.f32 %v330_v18 }
  0xa1   : > { %p848_p13 = por %p847_p11, %p846_p7 }
  0xa3   : > { %p849_p2 = pnand %p848_p13, %p842_p3 }
  0xa9   : > { %v776_v23 = vpop.eup %775 }
  0xaa   : > { %v778_v3 = vpop.eup %777  ;;  %v342_v24 = vxor.u32 2147483648, %v776_v23 }
  0xab   : > { %v339_v25 = vxor.u32 2147483648, %v778_v3 }
  0xac   : > { %v343_v26 = vsel %vm341_vm9, %v342_v24, %v778_v3  ;;  %v446_v27 = vsel %vm444_vm10, %v342_v24, %v778_v3 }
  0xad   : > { %v340_v28 = vsel %vm338_vm11, %v776_v23, %v339_v25  ;;  %v443_v29 = vsel %vm441_vm12, %v776_v23, %v339_v25 }
  0xae   : > { %v344_v30 = vsel %vm337_vm13, %v340_v28, %v343_v26  ;;  %v447_v31 = vsel %vm440_vm14, %v443_v29, %v446_v27  ;;  %v528_v27 = vstv %s676_s22  ;;  %v532_v28 = vstv %s685_s27 }
  0xaf   : > { %v1120_v32 = vsel %vm334_vm15, nan, %v344_v30  ;;  %v1122_v33 = vsel %vm334_vm15, nan, %v447_v31 }
  0xb0   : > { %v1128_v36 = vadd.f32 %v1122_v33, %v1122_v33 }
  0xb2   : > { %v472_v38 = vmul.f32 %v471_v34, %v1128_v36  ;;  %v476_v39 = vmul.f32 %v475_v35, %v1128_v36 }
  0xb4   : > { %v474_v40 = vadd.f32 %v473_v37, %v472_v38  ;;  %v478_v41 = vadd.f32 %v477_v0, %v476_v39  ;;  %v536_v0 = vstv %s450_s26  ;;  %v540_v38 = vstv %s460_s29 }
  0xb6   : > { %v479_v44 = vmul.f32 %v474_v40, %v1128_v36  ;;  %v483_v45 = vmul.f32 %v478_v41, %v1128_v36 }
  0xb8   : > { %v481_v46 = vadd.f32 %v480_v42, %v479_v44  ;;  %v485_v47 = vadd.f32 %v484_v43, %v483_v45 }
  0xba   : > { %v482_v48 = vsub.f32 %v481_v46, %v471_v34  ;;  %v486_v49 = vsub.f32 %v485_v47, %v475_v35 }
  0xbc   : > { %v487_v52 = vmul.f32 %v482_v48, %v1128_v36  ;;  %v491_v53 = vmul.f32 %v486_v49, %v1128_v36 }
  0xbe   : > { %v489_v54 = vadd.f32 %v488_v50, %v487_v52  ;;  %v493_v55 = vadd.f32 %v492_v51, %v491_v53 }
  0xc0   : > { %v490_v56 = vsub.f32 %v489_v54, %v474_v40  ;;  %v494_v57 = vsub.f32 %v493_v55, %v478_v41 }
  0xc2   : > { %v495_v60 = vmul.f32 %v490_v56, %v1128_v36  ;;  %v499_v61 = vmul.f32 %v494_v57, %v1128_v36 }
  0xc4   : > { %v497_v62 = vadd.f32 %v496_v58, %v495_v60  ;;  %v501_v63 = vadd.f32 %v500_v59, %v499_v61 }
  0xc6   : > { %v498_v1 = vsub.f32 %v497_v62, %v482_v48  ;;  %v502_v2 = vsub.f32 %v501_v63, %v486_v49  ;;  %v547_v48 = vstv %s470_s30 }
  0xc8   : > { %v503_v6 = vmul.f32 %v498_v1, %v1128_v36  ;;  %v507_v7 = vmul.f32 %v502_v2, %v1128_v36 }
  0xca   : > { %v505_v8 = vadd.f32 %v504_v4, %v503_v6  ;;  %v509_v9 = vadd.f32 %v508_v5, %v507_v7 }
  0xcc   : > { %v506_v10 = vsub.f32 %v505_v8, %v490_v56  ;;  %v510_v11 = vsub.f32 %v509_v9, %v494_v57 }
  0xce   : > { %v511_v14 = vmul.f32 %v506_v10, %v1128_v36  ;;  %v515_v15 = vmul.f32 %v510_v11, %v1128_v36 }
  0xd0   : > { %v513_v16 = vadd.f32 %v512_v12, %v511_v14  ;;  %v517_v17 = vadd.f32 %v516_v13, %v515_v15 }
  0xd2   : > { %v514_v18 = vsub.f32 %v513_v16, %v498_v1  ;;  %v518_v19 = vsub.f32 %v517_v17, %v502_v2 }
  0xd4   : > { %v519_v22 = vmul.f32 %v514_v18, %v1128_v36  ;;  %v523_v23 = vmul.f32 %v518_v19, %v1128_v36 }
  0xd6   : > { %v521_v3 = vadd.f32 %v520_v20, %v519_v22  ;;  %v525_v24 = vadd.f32 %v524_v21, %v523_v23 }
  0xd8   : > { %v522_v25 = vsub.f32 %v521_v3, %v506_v10  ;;  %v526_v26 = vsub.f32 %v525_v24, %v510_v11 }
  0xda   : > { %v527_v29 = vmul.f32 %v522_v25, %v1128_v36  ;;  %v531_v30 = vmul.f32 %v526_v26, %v1128_v36 }
  0xdc   : > { %v529_v31 = vadd.f32 %v528_v27, %v527_v29  ;;  %v533_v34 = vadd.f32 %v532_v28, %v531_v30 }
  0xde   : > { %v530_v35 = vsub.f32 %v529_v31, %v514_v18  ;;  %v534_v37 = vsub.f32 %v533_v34, %v518_v19 }
  0xe0   : > { %v535_v39 = vmul.f32 %v530_v35, %v1128_v36  ;;  %v539_v40 = vmul.f32 %v534_v37, %v1128_v36 }
  0xe2   : > { %v537_v41 = vadd.f32 %v536_v0, %v535_v39  ;;  %v541_v42 = vadd.f32 %v540_v38, %v539_v40 }
  0xe4   : > { %v538_v43 = vsub.f32 %v537_v41, %v522_v25  ;;  %v542_v44 = vsub.f32 %v541_v42, %v526_v26 }
  0xe6   : > { %v543_v45 = vmul.f32 %v538_v43, %v1120_v32  ;;  %v544_v46 = vmul.f32 %v542_v44, %v1122_v33 }
  0xe8   : > { %v545_v47 = vsub.f32 %v544_v46, %v534_v37 }
  0xea   : > { %v546_v49 = vadd.f32 %v545_v47, %v543_v45 }
  0xec   : > { %v548_v50 = vadd.f32 %v547_v48, %v546_v49 }
  0xee   : > { %549 = vst [vmem:[%s240_s9] sm:$0xff] %v548_v50 }
  0xef   : > { %852 = shalt.err (!%p849_p2)
}
  0xf0   : > { %s853_s25 = scalar_lea.hbm %s1156_s15, 128  ;;  %s857_s22 = scalar_lea.hbm %s1203_s4, 512 }
  0xf1   : > { %p854_p9 = scmp.ne.s32.totalorder %s1156_s15, %s853_s25  ;;  %p858_p1 = scmp.lt.u32.totalorder %s1156_s15, %s1203_s4 }
  0xf2   : > { %p859_p12 = scmp.lt.u32.totalorder %s857_s22, %s853_s25  ;;  %p861_p6 = scmp.lt.u32.totalorder %s853_s25, %s1156_s15 }
  0xf3   : > { %p855_p5 = pnand %p854_p9, %p1031_p8 }
  0xf4   : > { %p860_p4 = por %p859_p12, %p858_p1 }
  0xf5   : > { %p856_p10 = pneg %p855_p5 }
  0xf6   : > { %p862_p0 = por %p861_p6, %p860_p4 }
  0xf8   : > { %p863_p3 = pnand %p862_p0, %p856_p10 }
  0xfa   : > { %866 = shalt.err (!%p863_p3)
}
  0xfb   : > { %712 = dma.vmem_to_hbm [thread:$0]  (%p1031_p8), %s1158_s10, 128, %s1156_s15, %s551_s16  }
  0xfc PF: > { %p734_p7 = scmp.ge.s32.totalorder %s913_s20, 2  ;;  %s576_s29 = sand.u32 1, %s901_s17  }
  0xfd   : > { %p1220_p11 = scmp.ne.s32.totalorder %s1208_s23, 0  ;;  %s577_s30 = scalar_lea.sflag [#allocation5], %s576_s29 }
  0xff   : > { %p726_p13 = pnand %p734_p7, %p1220_p11 }
 0x101   : > { %896 = dma.done.wait (!%p726_p13), %s577_s30, 128  }
 0x102   : > { %898 = vsyncadd (!%p726_p13), %s577_s30, 4294967168  ;;  %p20_p2 = scmp.ge.s32.totalorder %s1012_s6, 6   ;;  %s1221_s17 = smov %s905_s18 }
 0x103   : > { %s1222_s18 = smov %s909_s19  ;;  %s1223_s19 = smov %s1027_s13 }
 0x104   : > { %s1224_s20 = smov %s1012_s6  ;;  %22 = sbr.rel (!%p20_p2) target bundleno = 9 (0x9), region = 90 }
 0x10b   :  { %582 = vsyncpa [#allocation4], 1 }
 0x10c   :  { %584 = vsyncpa [#allocation4 + $0x1], 1 }
 0x10d   :  { %585 = vsyncpa [#allocation5], 1 }
 0x10e   :  { %587 = vsyncpa [#allocation5 + $0x1], 1 }
 0x10f   :  { %588 = vsyncpa [#allocation6], 1 }
 0x110   :  { %590 = vsyncpa [#allocation6 + $0x1], 1 }
 0x111   :  { %591 = vsyncpa [#allocation9], 1 }

</bundles_post_ra>
